<compile_context>
chip_gen: v6e
topology: v6e:2x2x1
jax: 0.10.0
libtpu: 0.0.40
codegen_flags: <defaults>
</compile_context>

<pallas_src>
import jax
import jax.numpy as jnp
import numpy as np
from jax.experimental import pallas as pl
from jax.experimental.pallas import tpu as pltpu


def ca_kernel(x_ref, p_ref, w1_ref, shift_ref, wh_ref, ww_ref,
              eh_ref, ew_ref, o_ref):
    """One grid step: B_TILE images. Rows = B_TILE*C, lanes = HWp (128-mult)."""
    cr, c = w1_ref.shape
    h = eh_ref.shape[0]
    rows, _ = x_ref.shape
    bt = rows // c                       # static batch-tile size

    x = x_ref[...].astype(jnp.float32)   # (BT*C, HWp)

    # Fused coordinate pooling: mean-over-W and mean-over-H come out of one
    # K=HWp MXU contraction against the constant pooling matrix — one pass
    # over x, no cross-lane XLU reductions, no in-kernel relayout.
    pooled = jnp.dot(x, p_ref[...], preferred_element_type=jnp.float32)  # (BT*C, H+W)

    w1 = w1_ref[...]
    shift = shift_ref[...]
    wh = wh_ref[...]
    ww = ww_ref[...]
    eh = eh_ref[...]
    ew = ew_ref[...]

    # Per-image channel-mixing dots are tiny ((Cr,C)x(C,H+W), ...); B_TILE is
    # capped small, so a static unrolled loop keeps every dot a plain 2-D MXU
    # matmul (no rank-3 dot_general needed) and every slice tile-aligned.
    for b in range(bt):
        r0 = b * c
        pb = pooled[r0:r0 + c, :]                                        # (C, H+W)
        # conv_1x1 (BN scale folded into w1) + BN shift + ReLU — both the H
        # and W branches share this single dot over the (H+W) axis.
        yb = jnp.maximum(
            jnp.dot(w1, pb, preferred_element_type=jnp.float32) + shift, 0.0)  # (Cr, H+W)
        s_h = jax.nn.sigmoid(
            jnp.dot(wh, yb[:, :h], preferred_element_type=jnp.float32))  # (C, H)
        s_w = jax.nn.sigmoid(
            jnp.dot(ww, yb[:, h:], preferred_element_type=jnp.float32))  # (C, W)
        # Lane-dense gate expansion back to (C, HWp) via one-hot matmuls (no
        # (C, H, W) reshape / relayout inside the kernel).
        gate = (jnp.dot(s_h, eh, preferred_element_type=jnp.float32) *
                jnp.dot(s_w, ew, preferred_element_type=jnp.float32))    # (C, HWp)
        o_ref[r0:r0 + c, :] = (x[r0:r0 + c, :] * gate).astype(o_ref.dtype)


def ca_block(x, w1, wh, ww, bn_gamma, bn_beta, bn_mean, bn_var, eps=1e-5,
             block_bytes_target=1 << 20, max_b_tile=8):
    B, C, H, W = x.shape
    Cr = w1.shape[0]
    HW = H * W
    HWp = ((HW + 127) // 128) * 128      # lane-dense (128-multiple) spatial axis
    f32 = jnp.float32

    # Fold eval-mode BN into the conv_1x1 weight (scale) + per-channel shift.
    inv_std = 1.0 / jnp.sqrt(bn_var.astype(f32) + eps)
    scale = bn_gamma.astype(f32) * inv_std                               # (Cr,)
    shift = (bn_beta.astype(f32) - bn_mean.astype(f32) * scale).reshape(Cr, 1)
    w1f = w1.astype(f32) * scale[:, None]                                # (Cr, C)

    # Constant fused-pooling and one-hot expansion matrices, zero-padded to HWp
    # so padded x columns contribute nothing and padded output columns are 0.
    eye_h = jnp.eye(H, dtype=f32)
    eye_w = jnp.eye(W, dtype=f32)
    pool = jnp.concatenate(
        [jnp.kron(eye_h, jnp.ones((W, 1), f32)) / W,     # mean over W -> H cols
         jnp.kron(jnp.ones((H, 1), f32), eye_w) / H],    # mean over H -> W cols
        axis=1)                                          # (HW, H+W)
    pool = jnp.pad(pool, ((0, HWp - HW), (0, 0)))
    exp_h = jnp.pad(jnp.kron(eye_h, jnp.ones((1, W), f32)),
                    ((0, 0), (0, HWp - HW)))             # (H, HWp)
    exp_w = jnp.pad(jnp.kron(jnp.ones((1, H), f32), eye_w),
                    ((0, 0), (0, HWp - HW)))             # (W, HWp)

    # Free row-major flatten; pad lane axis only if H*W is not a 128-multiple.
    x_flat = x.reshape(B, C, HW)
    if HWp != HW:
        x_flat = jnp.pad(x_flat, ((0, 0), (0, 0), (0, HWp - HW)))
    x2d = x_flat.reshape(B * C, HWp)

    # Batch tile: make each grid step move >= ~1 MiB of x where possible (per
    # grid-step overhead ~0.35 us), cap the in-kernel unroll, keep a divisor
    # of B.  For tiny B this is the whole batch in one step.
    per_b = C * HWp * x.dtype.itemsize
    b_tile = max(1, min(B, max_b_tile, block_bytes_target // max(per_b, 1)))
    while B % b_tile:
        b_tile -= 1
    steps = B // b_tile
    block_rows = b_tile * C

    # Explicit VMEM budget: double-buffered in+out blocks + constants + slack.
    block_bytes = block_rows * HWp * x.dtype.itemsize
    const_bytes = 4 * int(pool.size + exp_h.size + exp_w.size +
                          w1f.size + shift.size + wh.size + ww.size)
    vmem_limit = int(min(110 << 20,                       # stay under HW budgets
                         max(32 << 20,                    # never below defaults
                             4 * block_bytes + 2 * const_bytes + (8 << 20))))

    elem = B * C * HW
    flops = int(2 * B * (C * HWp * (H + W)     # fused pooling dot
                         + Cr * C * (H + W)    # conv_1x1 (fused branches)
                         + C * Cr * (H + W)    # F_h / F_w
                         + C * (H + W) * HWp)  # gate expansion
                + 3 * elem)                    # gates * x
    cost = pl.CostEstimate(
        flops=flops,
        transcendentals=int(B * C * (H + W)),
        bytes_accessed=int(2 * elem * x.dtype.itemsize),
    )

    out2d = pl.pallas_call(
        ca_kernel,
        out_shape=jax.ShapeDtypeStruct((B * C, HWp), x.dtype),
        grid_spec=pltpu.PrefetchScalarGridSpec(
            num_scalar_prefetch=0,
            grid=(steps,),
            in_specs=[
                pl.BlockSpec((block_rows, HWp), lambda i: (i, 0)),  # x rows
                pl.BlockSpec((HWp, H + W), lambda i: (0, 0)),       # fused pooling
                pl.BlockSpec((Cr, C), lambda i: (0, 0)),            # conv_1x1 (BN folded)
                pl.BlockSpec((Cr, 1), lambda i: (0, 0)),            # BN shift
                pl.BlockSpec((C, Cr), lambda i: (0, 0)),            # F_h weight
                pl.BlockSpec((C, Cr), lambda i: (0, 0)),            # F_w weight
                pl.BlockSpec((H, HWp), lambda i: (0, 0)),           # expand H gate
                pl.BlockSpec((W, HWp), lambda i: (0, 0)),           # expand W gate
            ],
            out_specs=pl.BlockSpec((block_rows, HWp), lambda i: (i, 0)),
        ),
        compiler_params=pltpu.CompilerParams(
            dimension_semantics=("parallel",),
            vmem_limit_bytes=vmem_limit),
        cost_estimate=cost,
    )(x2d, pool, w1f, shift, wh, ww, exp_h, exp_w)

    return out2d.reshape(B, C, HWp)[:, :, :HW].reshape(B, C, H, W)


def ca_block_ref(x, w1, wh, ww, bn_gamma, bn_beta, bn_mean, bn_var, eps=1e-5):
    """Pure-JAX reference mirroring the PyTorch forward (eval-mode BN)."""
    B, C, H, W = x.shape
    x_h = jnp.mean(x, axis=3)                          # (B, C, H)
    x_w = jnp.mean(x, axis=2)                          # (B, C, W)
    cat = jnp.concatenate([x_h, x_w], axis=2)          # (B, C, H+W)
    y = jnp.einsum('rc,bcl->brl', w1, cat)
    y = (y - bn_mean[None, :, None]) / jnp.sqrt(bn_var[None, :, None] + eps)
    y = y * bn_gamma[None, :, None] + bn_beta[None, :, None]
    y = jnp.maximum(y, 0.0)
    yh, yw = y[:, :, :H], y[:, :, H:]
    s_h = jax.nn.sigmoid(jnp.einsum('cr,brh->bch', wh, yh))   # (B, C, H)
    s_w = jax.nn.sigmoid(jnp.einsum('cr,brw->bcw', ww, yw))   # (B, C, W)
    return x * s_h[:, :, :, None] * s_w[:, :, None, :]


if __name__ == "__main__":
    # Small shapes consistent with the module: channel=16, reduction=4 -> Cr=4.
    B, C, H, W = 2, 16, 16, 8
    R = 4
    Cr = C // R

    key = jax.random.PRNGKey(0)
    kx, k1, kh, kw, kg, kb = jax.random.split(key, 6)

    x = jax.random.normal(kx, (B, C, H, W), dtype=jnp.float32)

    # 1x1 conv weights stored as (out_channels, in_channels).
    w1 = 0.2 * jax.random.normal(k1, (Cr, C), dtype=jnp.float32)   # conv_1x1
    wh = 0.2 * jax.random.normal(kh, (C, Cr), dtype=jnp.float32)   # F_h
    ww = 0.2 * jax.random.normal(kw, (C, Cr), dtype=jnp.float32)   # F_w
    bn_gamma = 1.0 + 0.1 * jax.random.normal(kg, (Cr,), dtype=jnp.float32)
    bn_beta = 0.1 * jax.random.normal(kb, (Cr,), dtype=jnp.float32)
    bn_mean = jnp.zeros((Cr,), dtype=jnp.float32)
    bn_var = jnp.ones((Cr,), dtype=jnp.float32)

    out = jax.block_until_ready(
        ca_block(x, w1, wh, ww, bn_gamma, bn_beta, bn_mean, bn_var))
    ref = jax.block_until_ready(
        ca_block_ref(x, w1, wh, ww, bn_gamma, bn_beta, bn_mean, bn_var))

    assert out.shape == (B, C, H, W)
    # Pooled means are computed as MXU matmuls (different summation order /
    # precision than jnp.mean in the reference), so tolerance is 1e-4.
    np.testing.assert_allclose(np.asarray(out), np.asarray(ref),
                               rtol=1e-4, atol=1e-4)
    print("KERNEL_OK")
</pallas_src>

<mosaic_0001>
module attributes {stable_mosaic.version = 11 : i64} {
  func.func @ca_kernel(%arg0: i32, %arg1: memref<32x128xf32, #tpu.memory_space<vmem>>, %arg2: memref<128x24xf32, #tpu.memory_space<vmem>>, %arg3: memref<4x16xf32, #tpu.memory_space<vmem>>, %arg4: memref<4x1xf32, #tpu.memory_space<vmem>>, %arg5: memref<16x4xf32, #tpu.memory_space<vmem>>, %arg6: memref<16x4xf32, #tpu.memory_space<vmem>>, %arg7: memref<16x128xf32, #tpu.memory_space<vmem>>, %arg8: memref<8x128xf32, #tpu.memory_space<vmem>>, %arg9: memref<32x128xf32, #tpu.memory_space<vmem>>) attributes {dimension_semantics = [#tpu.dimension_semantics<parallel>], iteration_bounds = array<i64: 1>, scalar_prefetch = 0 : i64, scratch_operands = 0 : i64, tpu.core_type = #tpu.core_type<tc>, window_params = [{transform_indices = @transform_0, window_bounds = array<i64: 32, 128>}, {pipeline_mode = #tpu.pipeline_mode<synchronous>, transform_indices = @transform_1, window_bounds = array<i64: 128, 24>}, {pipeline_mode = #tpu.pipeline_mode<synchronous>, transform_indices = @transform_2, window_bounds = array<i64: 4, 16>}, {pipeline_mode = #tpu.pipeline_mode<synchronous>, transform_indices = @transform_3, window_bounds = array<i64: 4, 1>}, {pipeline_mode = #tpu.pipeline_mode<synchronous>, transform_indices = @transform_4, window_bounds = array<i64: 16, 4>}, {pipeline_mode = #tpu.pipeline_mode<synchronous>, transform_indices = @transform_5, window_bounds = array<i64: 16, 4>}, {pipeline_mode = #tpu.pipeline_mode<synchronous>, transform_indices = @transform_6, window_bounds = array<i64: 16, 128>}, {pipeline_mode = #tpu.pipeline_mode<synchronous>, transform_indices = @transform_7, window_bounds = array<i64: 8, 128>}, {transform_indices = @transform_8, window_bounds = array<i64: 32, 128>}]} {
    %c0 = arith.constant 0 : index
    %c0_0 = arith.constant 0 : index
    %0 = vector.load %arg1[%c0, %c0_0] : memref<32x128xf32, #tpu.memory_space<vmem>>, vector<32x128xf32>
    %c0_1 = arith.constant 0 : index
    %c0_2 = arith.constant 0 : index
    %1 = vector.load %arg2[%c0_1, %c0_2] : memref<128x24xf32, #tpu.memory_space<vmem>>, vector<128x24xf32>
    %cst = arith.constant dense<0.000000e+00> : vector<32x24xf32>
    %2 = tpu.matmul %0, %1, %cst {dimension_numbers = #tpu.dot_dimension_numbers<[1], [0], [0], [1], [0, 0, 1, 1], [], []>} : vector<32x128xf32>, vector<128x24xf32>, vector<32x24xf32> -> vector<32x24xf32>
    %c0_3 = arith.constant 0 : index
    %c0_4 = arith.constant 0 : index
    %3 = vector.load %arg3[%c0_3, %c0_4] : memref<4x16xf32, #tpu.memory_space<vmem>>, vector<4x16xf32>
    %c0_5 = arith.constant 0 : index
    %c0_6 = arith.constant 0 : index
    %4 = vector.load %arg4[%c0_5, %c0_6] : memref<4x1xf32, #tpu.memory_space<vmem>>, vector<4x1xf32>
    %c0_7 = arith.constant 0 : index
    %c0_8 = arith.constant 0 : index
    %5 = vector.load %arg5[%c0_7, %c0_8] : memref<16x4xf32, #tpu.memory_space<vmem>>, vector<16x4xf32>
    %c0_9 = arith.constant 0 : index
    %c0_10 = arith.constant 0 : index
    %6 = vector.load %arg6[%c0_9, %c0_10] : memref<16x4xf32, #tpu.memory_space<vmem>>, vector<16x4xf32>
    %c0_11 = arith.constant 0 : index
    %c0_12 = arith.constant 0 : index
    %7 = vector.load %arg7[%c0_11, %c0_12] : memref<16x128xf32, #tpu.memory_space<vmem>>, vector<16x128xf32>
    %c0_13 = arith.constant 0 : index
    %c0_14 = arith.constant 0 : index
    %8 = vector.load %arg8[%c0_13, %c0_14] : memref<8x128xf32, #tpu.memory_space<vmem>>, vector<8x128xf32>
    %9 = vector.extract_strided_slice %2 {offsets = [0, 0], sizes = [16, 24], strides = [1, 1]} : vector<32x24xf32> to vector<16x24xf32>
    %cst_15 = arith.constant dense<0.000000e+00> : vector<4x24xf32>
    %10 = tpu.matmul %3, %9, %cst_15 {dimension_numbers = #tpu.dot_dimension_numbers<[1], [0], [0], [1], [0, 0, 1, 1], [], []>} : vector<4x16xf32>, vector<16x24xf32>, vector<4x24xf32> -> vector<4x24xf32>
    %11 = vector.broadcast %4 : vector<4x1xf32> to vector<4x24xf32>
    %12 = arith.addf %10, %11 : vector<4x24xf32>
    %cst_16 = arith.constant 0.000000e+00 : f32
    %13 = vector.broadcast %cst_16 : f32 to vector<4x24xf32>
    %14 = arith.maximumf %12, %13 : vector<4x24xf32>
    %15 = vector.extract_strided_slice %14 {offsets = [0, 0], sizes = [4, 16], strides = [1, 1]} : vector<4x24xf32> to vector<4x16xf32>
    %cst_17 = arith.constant dense<0.000000e+00> : vector<16x16xf32>
    %16 = tpu.matmul %5, %15, %cst_17 {dimension_numbers = #tpu.dot_dimension_numbers<[1], [0], [0], [1], [0, 0, 1, 1], [], []>} : vector<16x4xf32>, vector<4x16xf32>, vector<16x16xf32> -> vector<16x16xf32>
    %17 = arith.negf %16 : vector<16x16xf32>
    %18 = math.exp %17 : vector<16x16xf32>
    %cst_18 = arith.constant 1.000000e+00 : f32
    %19 = vector.broadcast %cst_18 : f32 to vector<16x16xf32>
    %20 = arith.addf %19, %18 : vector<16x16xf32>
    %21 = arith.divf %19, %20 : vector<16x16xf32>
    %22 = vector.extract_strided_slice %14 {offsets = [0, 16], sizes = [4, 8], strides = [1, 1]} : vector<4x24xf32> to vector<4x8xf32>
    %cst_19 = arith.constant dense<0.000000e+00> : vector<16x8xf32>
    %23 = tpu.matmul %6, %22, %cst_19 {dimension_numbers = #tpu.dot_dimension_numbers<[1], [0], [0], [1], [0, 0, 1, 1], [], []>} : vector<16x4xf32>, vector<4x8xf32>, vector<16x8xf32> -> vector<16x8xf32>
    %24 = arith.negf %23 : vector<16x8xf32>
    %25 = math.exp %24 : vector<16x8xf32>
    %cst_20 = arith.constant 1.000000e+00 : f32
    %26 = vector.broadcast %cst_20 : f32 to vector<16x8xf32>
    %27 = arith.addf %26, %25 : vector<16x8xf32>
    %28 = arith.divf %26, %27 : vector<16x8xf32>
    %cst_21 = arith.constant dense<0.000000e+00> : vector<16x128xf32>
    %29 = tpu.matmul %21, %7, %cst_21 {dimension_numbers = #tpu.dot_dimension_numbers<[1], [0], [0], [1], [0, 0, 1, 1], [], []>} : vector<16x16xf32>, vector<16x128xf32>, vector<16x128xf32> -> vector<16x128xf32>
    %cst_22 = arith.constant dense<0.000000e+00> : vector<16x128xf32>
    %30 = tpu.matmul %28, %8, %cst_22 {dimension_numbers = #tpu.dot_dimension_numbers<[1], [0], [0], [1], [0, 0, 1, 1], [], []>} : vector<16x8xf32>, vector<8x128xf32>, vector<16x128xf32> -> vector<16x128xf32>
    %31 = arith.mulf %29, %30 : vector<16x128xf32>
    %32 = vector.extract_strided_slice %0 {offsets = [0, 0], sizes = [16, 128], strides = [1, 1]} : vector<32x128xf32> to vector<16x128xf32>
    %33 = arith.mulf %32, %31 : vector<16x128xf32>
    %c0_23 = arith.constant 0 : index
    %c0_24 = arith.constant 0 : index
    %34 = vector.load %arg9[%c0_23, %c0_24] : memref<32x128xf32, #tpu.memory_space<vmem>>, vector<16x128xf32>
    tpu.vector_store %arg9[%c0_23, %c0_24], %33 {strides = array<i32>} : memref<32x128xf32, #tpu.memory_space<vmem>>, vector<16x128xf32>,
    %35 = vector.extract_strided_slice %2 {offsets = [16, 0], sizes = [16, 24], strides = [1, 1]} : vector<32x24xf32> to vector<16x24xf32>
    %cst_25 = arith.constant dense<0.000000e+00> : vector<4x24xf32>
    %36 = tpu.matmul %3, %35, %cst_25 {dimension_numbers = #tpu.dot_dimension_numbers<[1], [0], [0], [1], [0, 0, 1, 1], [], []>} : vector<4x16xf32>, vector<16x24xf32>, vector<4x24xf32> -> vector<4x24xf32>
    %37 = vector.broadcast %4 : vector<4x1xf32> to vector<4x24xf32>
    %38 = arith.addf %36, %37 : vector<4x24xf32>
    %cst_26 = arith.constant 0.000000e+00 : f32
    %39 = vector.broadcast %cst_26 : f32 to vector<4x24xf32>
    %40 = arith.maximumf %38, %39 : vector<4x24xf32>
    %41 = vector.extract_strided_slice %40 {offsets = [0, 0], sizes = [4, 16], strides = [1, 1]} : vector<4x24xf32> to vector<4x16xf32>
    %cst_27 = arith.constant dense<0.000000e+00> : vector<16x16xf32>
    %42 = tpu.matmul %5, %41, %cst_27 {dimension_numbers = #tpu.dot_dimension_numbers<[1], [0], [0], [1], [0, 0, 1, 1], [], []>} : vector<16x4xf32>, vector<4x16xf32>, vector<16x16xf32> -> vector<16x16xf32>
    %43 = arith.negf %42 : vector<16x16xf32>
    %44 = math.exp %43 : vector<16x16xf32>
    %cst_28 = arith.constant 1.000000e+00 : f32
    %45 = vector.broadcast %cst_28 : f32 to vector<16x16xf32>
    %46 = arith.addf %45, %44 : vector<16x16xf32>
    %47 = arith.divf %45, %46 : vector<16x16xf32>
    %48 = vector.extract_strided_slice %40 {offsets = [0, 16], sizes = [4, 8], strides = [1, 1]} : vector<4x24xf32> to vector<4x8xf32>
    %cst_29 = arith.constant dense<0.000000e+00> : vector<16x8xf32>
    %49 = tpu.matmul %6, %48, %cst_29 {dimension_numbers = #tpu.dot_dimension_numbers<[1], [0], [0], [1], [0, 0, 1, 1], [], []>} : vector<16x4xf32>, vector<4x8xf32>, vector<16x8xf32> -> vector<16x8xf32>
    %50 = arith.negf %49 : vector<16x8xf32>
    %51 = math.exp %50 : vector<16x8xf32>
    %cst_30 = arith.constant 1.000000e+00 : f32
    %52 = vector.broadcast %cst_30 : f32 to vector<16x8xf32>
    %53 = arith.addf %52, %51 : vector<16x8xf32>
    %54 = arith.divf %52, %53 : vector<16x8xf32>
    %cst_31 = arith.constant dense<0.000000e+00> : vector<16x128xf32>
    %55 = tpu.matmul %47, %7, %cst_31 {dimension_numbers = #tpu.dot_dimension_numbers<[1], [0], [0], [1], [0, 0, 1, 1], [], []>} : vector<16x16xf32>, vector<16x128xf32>, vector<16x128xf32> -> vector<16x128xf32>
    %cst_32 = arith.constant dense<0.000000e+00> : vector<16x128xf32>
    %56 = tpu.matmul %54, %8, %cst_32 {dimension_numbers = #tpu.dot_dimension_numbers<[1], [0], [0], [1], [0, 0, 1, 1], [], []>} : vector<16x8xf32>, vector<8x128xf32>, vector<16x128xf32> -> vector<16x128xf32>
    %57 = arith.mulf %55, %56 : vector<16x128xf32>
    %58 = vector.extract_strided_slice %0 {offsets = [16, 0], sizes = [16, 128], strides = [1, 1]} : vector<32x128xf32> to vector<16x128xf32>
    %59 = arith.mulf %58, %57 : vector<16x128xf32>
    %c16 = arith.constant 16 : index
    %c0_33 = arith.constant 0 : index
    %60 = vector.load %arg9[%c16, %c0_33] : memref<32x128xf32, #tpu.memory_space<vmem>>, vector<16x128xf32>
    tpu.vector_store %arg9[%c16, %c0_33], %59 {strides = array<i32>} : memref<32x128xf32, #tpu.memory_space<vmem>>, vector<16x128xf32>,
    return
  }
  func.func @transform_0(%arg0: i32) -> (i32, i32) {
    %c0_i32 = arith.constant 0 : i32
    %c0_i32_0 = arith.constant 0 : i32
    return %arg0, %c0_i32 : i32, i32
  }
  func.func @transform_1(%arg0: i32) -> (i32, i32) {
    %c0_i32 = arith.constant 0 : i32
    %c0_i32_0 = arith.constant 0 : i32
    %c0_i32_1 = arith.constant 0 : i32
    return %c0_i32, %c0_i32_0 : i32, i32
  }
  func.func @transform_2(%arg0: i32) -> (i32, i32) {
    %c0_i32 = arith.constant 0 : i32
    %c0_i32_0 = arith.constant 0 : i32
    %c0_i32_1 = arith.constant 0 : i32
    return %c0_i32, %c0_i32_0 : i32, i32
  }
  func.func @transform_3(%arg0: i32) -> (i32, i32) {
    %c0_i32 = arith.constant 0 : i32
    %c0_i32_0 = arith.constant 0 : i32
    %c0_i32_1 = arith.constant 0 : i32
    return %c0_i32, %c0_i32_0 : i32, i32
  }
  func.func @transform_4(%arg0: i32) -> (i32, i32) {
    %c0_i32 = arith.constant 0 : i32
    %c0_i32_0 = arith.constant 0 : i32
    %c0_i32_1 = arith.constant 0 : i32
    return %c0_i32, %c0_i32_0 : i32, i32
  }
  func.func @transform_5(%arg0: i32) -> (i32, i32) {
    %c0_i32 = arith.constant 0 : i32
    %c0_i32_0 = arith.constant 0 : i32
    %c0_i32_1 = arith.constant 0 : i32
    return %c0_i32, %c0_i32_0 : i32, i32
  }
  func.func @transform_6(%arg0: i32) -> (i32, i32) {
    %c0_i32 = arith.constant 0 : i32
    %c0_i32_0 = arith.constant 0 : i32
    %c0_i32_1 = arith.constant 0 : i32
    return %c0_i32, %c0_i32_0 : i32, i32
  }
  func.func @transform_7(%arg0: i32) -> (i32, i32) {
    %c0_i32 = arith.constant 0 : i32
    %c0_i32_0 = arith.constant 0 : i32
    %c0_i32_1 = arith.constant 0 : i32
    return %c0_i32, %c0_i32_0 : i32, i32
  }
  func.func @transform_8(%arg0: i32) -> (i32, i32) {
    %c0_i32 = arith.constant 0 : i32
    %c0_i32_0 = arith.constant 0 : i32
    return %arg0, %c0_i32 : i32, i32
  }
}

</mosaic_0001>

<bundles_post_ra>
// kernel: tpu_custom_call.1
= control target key start
LH: loop header
LB: loop body
LE: loop exit
PB: predicated region body
PF: predicated region fallthrough
CT: control target
= control target key end

     0   :  { %s1494_s0 = inlined_call_operand.vmem [shape: f32[32,128], index: 0, kind: input, shape index: {}]   ;;  %s1495_s1 = inlined_call_operand.vmem [shape: f32[128,24], index: 1, kind: input, shape index: {}]   ;;  %s1496_s2 = inlined_call_operand.vmem [shape: f32[4,16], index: 2, kind: input, shape index: {}]   ;;  %s1497_s3 = inlined_call_operand.vmem [shape: f32[4,1], index: 3, kind: input, shape index: {}]   ;;  %s1498_s4 = inlined_call_operand.vmem [shape: f32[16,4], index: 4, kind: input, shape index: {}]   ;;  %s1499_s5 = inlined_call_operand.vmem [shape: f32[16,4], index: 5, kind: input, shape index: {}]   ;;  %s1500_s6 = inlined_call_operand.vmem [shape: f32[16,128], index: 6, kind: input, shape index: {}]   ;;  %s1501_s7 = inlined_call_operand.vmem [shape: f32[8,128], index: 7, kind: input, shape index: {}]   ;;  %s1502_s8 = inlined_call_operand.hbm [shape: f32[32,128], index: 8, kind: output, shape index: {}]  }
   0x1   :  { %v49_v0 = vld [vmem:[%s1495_s1 + $0x78] sm:$0xff]  ;;  %v48_v1 = vld [vmem:[%s1495_s1 + $0x70] sm:$0xff]  ;;  %v47_v2 = vld [vmem:[%s1495_s1 + $0x68] sm:$0xff] }
   0x2   :  { %1106 = vmatprep.subr.mxu0 %v49_v0  ;;  %v46_v3 = vld [vmem:[%s1495_s1 + $0x60] sm:$0xff]  ;;  %v45_v5 = vld [vmem:[%s1495_s1 + $0x58] sm:$0xff] }
   0x3   :  { %1107 = vmatpush3.msra.mxu0 %v49_v0  ;;  %v1331_v4 = vld [vmem:[%s1494_s0] sm:$0xff] }
   0x4   :  { %1108 = vmatprep.subr.mxu0 %v48_v1  ;;  %1138 = vmatprep.mubr.f32.mxu0 %v1331_v4 }
   0x5   :  { %1109 = vmatpush3.msra.mxu0 %v48_v1 }
   0x6   :  { %1110 = vmatprep.subr.mxu0 %v47_v2 }
   0x7   :  { %1111 = vmatpush3.msra.mxu0 %v47_v2 }
   0x8   :  { %13 = vsyncpa [#allocation3], 0  ;;  %1112 = vmatprep.subr.mxu0 %v46_v3  ;;  %v44_v6 = vld [vmem:[%s1495_s1 + $0x50] sm:$0xff]  ;;  %v43_v7 = vld [vmem:[%s1495_s1 + $0x48] sm:$0xff]  ;;  %v1264_v18 = vmov 0.0   ;;  %vm1265_vm0 = vmmov 0  }
   0x9   :  { %1113 = vmatpush3.msra.mxu0 %v46_v3  ;;  %v42_v8 = vld [vmem:[%s1495_s1 + $0x40] sm:$0xff]  ;;  %v41_v9 = vld [vmem:[%s1495_s1 + $0x38] sm:$0xff]  ;;  %v40_v10 = vld [vmem:[%s1495_s1 + $0x30] sm:$0xff]  ;;  %1144 = vmatprep.subr.mxu1 %v1264_v18  ;;  %v1266_v20 = vmov 0   ;;  %vm149_vm1 = vcmask 130048   ;;  %vm224_vm2 = vcmask 31744  }
   0xa   :  { %1114 = vmatprep.subr.mxu0 %v45_v5  ;;  %v39_v11 = vld [vmem:[%s1495_s1 + $0x28] sm:$0xff]  ;;  %v38_v12 = vld [vmem:[%s1495_s1 + $0x20] sm:$0xff]  ;;  %v37_v13 = vld [vmem:[%s1495_s1 + $0x18] sm:$0xff]  ;;  %1148 = vmatprep.mubr.msk.f32.mxu1 %vm1265_vm0, %v1264_v18  ;;  %vm231_vm3 = vcmask 1043456   ;;  %s1267_s28 = smov 112   ;;  %vm500_vm4 = vcmask 64512  }
   0xb   :  { %1115 = vmatpush3.msra.mxu0 %v45_v5  ;;  %v36_v14 = vld [vmem:[%s1495_s1 + $0x10] sm:$0xff]  ;;  %v35_v15 = vld [vmem:[%s1495_s1 + $0x8] sm:$0xff]  ;;  %v34_v16 = vld [vmem:[%s1495_s1] sm:$0xff]  ;;  %1209 = vset.pattern.permute.xlu0 %v1266_v20 }
   0xc   :  { %1116 = vmatprep.subr.mxu0 %v44_v6  ;;  %v1373_v17 = vld [vmem:[%s1494_s0 + $0x8] sm:$0xff]  ;;  %v136_v19 = vld [vmem:[%s1497_s3] sm:$0xf]  ;;  %v1400_v25 = vld [vmem:[%s1494_s0 + $0x10] sm:$0xff] }
   0xd   :  { %1117 = vmatpush3.msra.mxu0 %v44_v6  ;;  %146 = vperm.xlu0 %1209, %v136_v19   ;;  %v1385_v22 = vld [vmem:[%s1496_s2] sm:$0xf]  ;;  %v1405_v26 = vld [vmem:[%s1494_s0 + $0x18] sm:$0xff]  ;;  %v1415_v32 = vld [vmem:[%s1498_s4 + $0x8] sm:$0xff] }
   0xe   :  { %1118 = vmatprep.subr.mxu0 %v43_v7  ;;  %v1393_v24 = vld [vmem:[%s1498_s4] sm:$0xff]  ;;  %v1432_v35 = vld [vmem:[%s1499_s5 + $0x8] sm:$0xff] }
   0xf   :  { %1119 = vmatpush3.msra.mxu0 %v43_v7  ;;  %v1422_v33 = vld [vmem:[%s1499_s5] sm:$0xff]  ;;  %v1441_v40 = vld [vmem:[%s1500_s6 + $0x8] sm:$0xff] }
  0x10   :  { %1120 = vmatprep.subr.mxu0 %v42_v8  ;;  %v1446_v41 = vld [vmem:[%s1500_s6] sm:$0xff]  ;;  %s1268_s6 = smov [#allocation2]  }
  0x11   :  { %1121 = vmatpush3.msra.mxu0 %v42_v8  ;;  %v143_v42 = vld [vmem:[%s1501_s7] sm:$0xff]  ;;  %s1013_s7 = sshll.u32 %s1268_s6, 4  ;;  %s1014_s7 = int_to_ptr.vmem [resolvable:$true] %s1013_s7 }
  0x12   :  { %1122 = vmatprep.subr.mxu0 %v41_v9  ;;  %s1242_s14 = scalar_lea.vmem %s1014_s7, 512  ;;  %p1247_p1 = scmp.lt.s32.totalorder %s1014_s7, %s1014_s7 }
  0x13   :  { %1123 = vmatpush3.msra.mxu0 %v41_v9  ;;  %p1243_p0 = scmp.ne.s32.totalorder %s1014_s7, %s1242_s14  ;;  %p1248_p2 = scmp.lt.s32.totalorder %s1242_s14, %s1242_s14 }
  0x14   :  { %1124 = vmatprep.subr.mxu0 %v40_v10 }
  0x15   :  { %1125 = vmatpush3.msra.mxu0 %v40_v10  ;;  %p1249_p3 = por %p1248_p2, %p1247_p1 }
  0x16   :  { %1126 = vmatprep.subr.mxu0 %v39_v11 }
  0x17   :  { %1127 = vmatpush3.msra.mxu0 %v39_v11  ;;  %p1250_p4 = pnand %p1249_p3, %p1243_p0 }
  0x18   :  { %1128 = vmatprep.subr.mxu0 %v38_v12 }
  0x19   :  { %1129 = vmatpush3.msra.mxu0 %v38_v12 }
  0x1a   :  { %1130 = vmatprep.subr.mxu0 %v37_v13 }
  0x1b   :  { %1131 = vmatpush3.msra.mxu0 %v37_v13 }
  0x1c   :  { %1132 = vmatprep.subr.mxu0 %v36_v14 }
  0x1d   :  { %1133 = vmatpush3.msra.mxu0 %v36_v14 }
  0x1e   :  { %1134 = vmatprep.subr.mxu0 %v35_v15 }
  0x1f   :  { %1135 = vmatpush3.msra.mxu0 %v35_v15 }
  0x20   :  { %1136 = vmatprep.subr.mxu0 %v34_v16 }
  0x21   :  { %1137 = vmatpush3.msra.mxu0 %v34_v16 }
  0x22   :  { %1139 = vmatmul.mubr.f32.vlgmr.msra.gmra.mxu0 %v1373_v17  ;;  %1197 = vmatprep.subr.mxu0 %v143_v42 }
  0x23   :  { %1141 = vmatprep.mubr.f32.mxu0 %v1400_v25  ;;  %1198 = vmatpush3.msra.mxu0 %v143_v42 }
  0x26   :  { %1142 = vmatmul.mubr.f32.gmra.mxu0 %v1405_v26 }
  0x88   :  { %v1409_v27 = vpop.permute.xlu0 %146 }
  0xe2   :  { %v1140_v21 = vpop.f32.mrf.mxu0 }
  0xe3   :  { %1145 = vmatpush3.msra.mxu1 %v1140_v21 }
  0xe4   :  { %v116_v23 = vpop.f32.mrf.mxu0  ;;  %1146 = vmatprep.subr.mxu1 %v1264_v18 }
  0xe5   :  { %1147 = vmatpush3.msra.mxu1 %v116_v23 }
  0xe6   :  { %1149 = vmatmul.mubr.msk.f32.vlgmr.msra.gmra.mxu1 %vm149_vm1, %v1385_v22  ;;  %v1143_v57 = vpop.f32.mrf.mxu0 }
  0xe7   :  { %1153 = vmatprep.mubr.msk.f32.mxu1 %vm224_vm2, %v1393_v24 }
  0xe8   :  { %v126_v60 = vpop.f32.mrf.mxu0 }
 0x1a6   :  { %v219_v28 = vpop.f32.mrf.mxu1 }
 0x1a7   :  { %v220_v29 = vadd.f32 %v219_v28, %v1409_v27 }
 0x1a8   :  { %v1150_v30 = vpop.f32.mrf.mxu1 }
 0x1a9   :  { %v223_v31 = vmax.f32 %v220_v29, 0.0 }
 0x1ab   :  { %322 = vrot.lane.b32.xlu0 %v223_v31, %s1267_s28  ;;  %1151 = vmatprep.subr.msk.mxu1 %vm231_vm3, %v223_v31 }
 0x1ac   :  { %1152 = vmatpush3.msk.msra.mxu1 %vm231_vm3, %v223_v31 }
 0x1ad   :  { %1154 = vmatmul.mubr.msk.f32.vlgmr.msra.gmra.mxu1 %vm224_vm2, %v1415_v32 }
 0x1ae   :  { %1158 = vmatprep.mubr.msk.f32.mxu1 %vm224_vm2, %v1422_v33 }
 0x21d   :  { %v323_v34 = vpop.permute.xlu0 %322 }
 0x21e   :  { %1156 = vmatprep.subr.msk.mxu1 %vm231_vm3, %v323_v34 }
 0x21f   :  { %1157 = vmatpush3.msk.msra.mxu1 %vm231_vm3, %v323_v34 }
 0x220   :  { %1159 = vmatmul.mubr.msk.f32.vlgmr.msra.gmra.mxu1 %vm224_vm2, %v1432_v35  ;;  %1161 = vmatprep.subr.mxu1 %v1441_v40 }
 0x221   :  { %1162 = vmatpush3.msra.mxu1 %v1441_v40 }
 0x222   :  { %1163 = vmatprep.subr.mxu1 %v1446_v41 }
 0x223   :  { %1164 = vmatpush3.msra.mxu1 %v1446_v41 }
 0x224   :  { %1168 = vmatprep.subr.mxu1 %v143_v42 }
 0x26d   :  { %v1155_v36 = vpop.f32.mrf.mxu1 }
 0x26e   :  { %v1029_v37 = vmul.f32 -1.442695, %v1155_v36 }
 0x26f   :  { %v301_v38 = vpop.f32.mrf.mxu1 }
 0x270   :  { %1210 = vpow2.f32 %v1029_v37  ;;  %v1028_v39 = vmul.f32 -1.442695, %v301_v38 }
 0x272   :  { %1212 = vpow2.f32 %v1028_v39 }
 0x27d   :  { %v1211_v43 = vpop.eup %1210 }
 0x27e   :  { %v317_v44 = vadd.f32 1.0, %v1211_v43 }
 0x27f   :  { %v1213_v45 = vpop.eup %1212 }
 0x280   :  { %v316_v46 = vadd.f32 1.0, %v1213_v45  ;;  %1214 = vrcp.f32 %v317_v44 }
 0x282   :  { %1216 = vrcp.f32 %v316_v46 }
 0x28d   :  { %v1215_v47 = vpop.eup %1214 }
 0x28f   :  { %v1217_v48 = vpop.eup %1216 }
 0x290   :  { %1165 = vmatprep.mubr.msk.f32.mxu1 %vm149_vm1, %v1217_v48 }
 0x291   :  { %1166 = vmatmul.mubr.msk.f32.vlgmr.msra.gmra.mxu1 %vm149_vm1, %v1215_v47 }
 0x292   :  { %1169 = vmatpush3.msra.mxu1 %v143_v42 }
 0x293   :  { %1173 = vmatprep.subr.mxu1 %v1264_v18 }
 0x2e0   :  { %v1160_v49 = vpop.f32.mrf.mxu1 }
 0x2e1   :  { %v1034_v50 = vmul.f32 -1.442695, %v1160_v49 }
 0x2e2   :  { %v398_v51 = vpop.f32.mrf.mxu1 }
 0x2e3   :  { %1218 = vpow2.f32 %v1034_v50  ;;  %v1033_v52 = vmul.f32 -1.442695, %v398_v51 }
 0x2e5   :  { %1220 = vpow2.f32 %v1033_v52 }
 0x2f0   :  { %v1219_v53 = vpop.eup %1218 }
 0x2f1   :  { %v414_v55 = vadd.f32 1.0, %v1219_v53 }
 0x2f2   :  { %v1221_v54 = vpop.eup %1220 }
 0x2f3   :  { %v413_v56 = vadd.f32 1.0, %v1221_v54 }
 0x2f5   :  { %1222 = vrcp.f32 %v413_v56 }
 0x2f6   :  { %1224 = vrcp.f32 %v414_v55 }
 0x302   :  { %v1223_v58 = vpop.eup %1222 }
 0x303   :  { %v1225_v59 = vpop.eup %1224  ;;  %1170 = vmatprep.mubr.msk.f32.mxu1 %vm500_vm4, %v1223_v58 }
 0x304   :  { %1171 = vmatmul.mubr.msk.f32.vlgmr.msra.gmra.mxu1 %vm500_vm4, %v1225_v59 }
 0x305   :  { %1174 = vmatpush3.msra.mxu1 %v1143_v57  ;;  %1177 = vmatprep.mubr.msk.f32.mxu1 %vm1265_vm0, %v1264_v18 }
 0x306   :  { %1175 = vmatprep.subr.mxu1 %v1264_v18 }
 0x307   :  { %1176 = vmatpush3.msra.mxu1 %v126_v60 }
 0x308   :  { %1178 = vmatmul.mubr.msk.f32.vlgmr.msra.gmra.mxu1 %vm149_vm1, %v1385_v22 }
 0x309   :  { %1182 = vmatprep.mubr.msk.f32.mxu1 %vm224_vm2, %v1393_v24 }
 0x351   :  { %v1167_v61 = vpop.f32.mrf.mxu1 }
 0x353   :  { %v491_v62 = vpop.f32.mrf.mxu1 }
 0x3c4   :  { %v1172_v63 = vpop.f32.mrf.mxu1 }
 0x3c5   :  { %v583_v0 = vmul.f32 %v1172_v63, %v1167_v61 }
 0x3c6   :  { %v573_v1 = vpop.f32.mrf.mxu1 }
 0x3c7   :  { %v585_v2 = vmul.f32 %v583_v0, %v1373_v17  ;;  %v582_v3 = vmul.f32 %v573_v1, %v491_v62 }
 0x3c8   :  { %v654_v5 = vpop.f32.mrf.mxu1 }
 0x3c9   :  { %587 = vst [vmem:[#allocation2 + $0x8] sm:$0xff] %v585_v2  ;;  %v584_v6 = vmul.f32 %v582_v3, %v1331_v4  ;;  %v655_v7 = vadd.f32 %v654_v5, %v1409_v27 }
 0x3ca   :  { %v1179_v8 = vpop.f32.mrf.mxu1 }
 0x3cb   :  { %586 = vst [vmem:[#allocation2] sm:$0xff] %v584_v6  ;;  %v658_v9 = vmax.f32 %v655_v7, 0.0 }
 0x3cd   :  { %749 = vrot.lane.b32.xlu1 %v658_v9, %s1267_s28  ;;  %1180 = vmatprep.subr.msk.mxu1 %vm231_vm3, %v658_v9 }
 0x3ce   :  { %1181 = vmatpush3.msk.msra.mxu1 %vm231_vm3, %v658_v9 }
 0x3cf   :  { %1183 = vmatmul.mubr.msk.f32.vlgmr.msra.gmra.mxu1 %vm224_vm2, %v1415_v32 }
 0x3d0   :  { %1187 = vmatprep.mubr.msk.f32.mxu1 %vm224_vm2, %v1422_v33 }
 0x43f   :  { %v750_v10 = vpop.permute.xlu1 %749 }
 0x440   :  { %1185 = vmatprep.subr.msk.mxu1 %vm231_vm3, %v750_v10 }
 0x441   :  { %1186 = vmatpush3.msk.msra.mxu1 %vm231_vm3, %v750_v10 }
 0x442   :  { %1188 = vmatmul.mubr.msk.f32.vlgmr.msra.gmra.mxu1 %vm224_vm2, %v1432_v35  ;;  %1190 = vmatprep.subr.mxu1 %v1441_v40 }
 0x443   :  { %1191 = vmatpush3.msra.mxu1 %v1441_v40 }
 0x444   :  { %1192 = vmatprep.subr.mxu1 %v1446_v41 }
 0x445   :  { %1193 = vmatpush3.msra.mxu1 %v1446_v41 }
 0x48f   :  { %v1184_v4 = vpop.f32.mrf.mxu1 }
 0x490   :  { %v1044_v11 = vmul.f32 -1.442695, %v1184_v4 }
 0x491   :  { %v728_v12 = vpop.f32.mrf.mxu1 }
 0x492   :  { %1226 = vpow2.f32 %v1044_v11  ;;  %v1043_v13 = vmul.f32 -1.442695, %v728_v12 }
 0x494   :  { %1228 = vpow2.f32 %v1043_v13 }
 0x49f   :  { %v1227_v14 = vpop.eup %1226 }
 0x4a0   :  { %v744_v15 = vadd.f32 1.0, %v1227_v14 }
 0x4a1   :  { %v1229_v16 = vpop.eup %1228 }
 0x4a2   :  { %v743_v17 = vadd.f32 1.0, %v1229_v16  ;;  %1230 = vrcp.f32 %v744_v15 }
 0x4a4   :  { %1232 = vrcp.f32 %v743_v17 }
 0x4af   :  { %v1231_v18 = vpop.eup %1230 }
 0x4b1   :  { %v1233_v19 = vpop.eup %1232 }
 0x4b2   :  { %1194 = vmatprep.mubr.msk.f32.mxu1 %vm149_vm1, %v1233_v19 }
 0x4b3   :  { %1195 = vmatmul.mubr.msk.f32.vlgmr.msra.gmra.mxu1 %vm149_vm1, %v1231_v18 }
 0x502   :  { %v1189_v20 = vpop.f32.mrf.mxu1 }
 0x503   :  { %v1049_v21 = vmul.f32 -1.442695, %v1189_v20 }
 0x504   :  { %v819_v22 = vpop.f32.mrf.mxu1 }
 0x505   :  { %1234 = vpow2.f32 %v1049_v21  ;;  %v1048_v23 = vmul.f32 -1.442695, %v819_v22 }
 0x507   :  { %1236 = vpow2.f32 %v1048_v23 }
 0x512   :  { %v1235_v24 = vpop.eup %1234 }
 0x513   :  { %v835_v28 = vadd.f32 1.0, %v1235_v24 }
 0x514   :  { %v1237_v27 = vpop.eup %1236 }
 0x515   :  { %v834_v29 = vadd.f32 1.0, %v1237_v27 }
 0x517   :  { %1238 = vrcp.f32 %v834_v29 }
 0x518   :  { %1240 = vrcp.f32 %v835_v28 }
 0x524   :  { %v1239_v30 = vpop.eup %1238 }
 0x525   :  { %v1241_v31 = vpop.eup %1240  ;;  %1199 = vmatprep.mubr.msk.f32.mxu0 %vm500_vm4, %v1239_v30 }
 0x526   :  { %1200 = vmatmul.mubr.msk.f32.vlgmr.msra.gmra.mxu0 %vm500_vm4, %v1241_v31 }
 0x573   :  { %v1196_v32 = vpop.f32.mrf.mxu1 }
 0x575   :  { %v912_v35 = vpop.f32.mrf.mxu1 }
 0x5e6   :  { %v1201_v33 = vpop.f32.mrf.mxu0 }
 0x5e7   :  { %v1003_v34 = vmul.f32 %v1201_v33, %v1196_v32 }
 0x5e8   :  { %v993_v36 = vpop.f32.mrf.mxu0 }
 0x5e9   :  { %v1005_v37 = vmul.f32 %v1003_v34, %v1405_v26  ;;  %v1002_v38 = vmul.f32 %v993_v36, %v912_v35 }
 0x5eb   :  { %1007 = vst [vmem:[#allocation2 + $0x18] sm:$0xff] %v1005_v37  ;;  %v1004_v39 = vmul.f32 %v1002_v38, %v1400_v25 }
 0x5ed   :  { %1006 = vst [vmem:[#allocation2 + $0x10] sm:$0xff] %v1004_v39 }
 0x5ee   :  { %1253 = shalt.err (!%p1250_p4)
}
 0x5ef   :  { %s1269_s15 = smov 128   ;;  %s1270_s16 = smov 8  }
 0x5f0   :  { %1019 = dma.vmem_to_hbm [thread:$0]  %s1014_s7, 512, %s1502_s8, [#allocation3], %s1269_s15, %s1269_s15, %s1270_s16  }
 0x5f1   :  { %1262 = dma.done.wait [#allocation3], 512  }
 0x5f2   :  { %1263 = vsyncadd [#allocation3], 4294966784 }
 0x5f3   :  { %1023 = vsyncpa [#allocation3], 1 }

</bundles_post_ra>
